<compile_context>
chip_gen: v7x
topology: tpu7x:2x2x1
jax: 0.10.0
libtpu: 0.0.40
codegen_flags: <defaults>
</compile_context>

<pallas_src>
import functools
import math

import jax
import jax.numpy as jnp
from jax.experimental import pallas as pl
from jax.experimental.pallas import tpu as pltpu


def _conv_cq_kernel(w_ref, b_ref, x_ref, o_ref, *, num_filters, Ho, Wo):
    # w_ref : (F, 9)      f32 SMEM -- flattened 3x3 weights (last in-channel)
    # b_ref : (F,)        f32 SMEM -- bias
    # x_ref : (H, W)      f32 VMEM -- input channel 0 of one batch element
    # o_ref : (F, Ho, Wo) f32 VMEM
    x = x_ref[...]                                      # one ~1 KB VMEM load
    # 9 shifted "im2col" taps, built once and reused for every filter.
    taps = [x[c:c + Ho, d:d + Wo] for c in range(3) for d in range(3)]
    for f in range(num_filters):                        # F is small: unrolled
        acc = taps[0] * w_ref[f, 0]
        for t in range(1, 9):
            acc = acc + taps[t] * w_ref[f, t]           # VPU broadcast-MACs
        o_ref[f] = acc + b_ref[f]


def conv2d_cq_pallas(x, weight, bias):
    """x: (N, C, H, W) f32; weight: (F, C, 3, 3) f32; bias: (F,) f32."""
    N, C, H, W = x.shape
    F_out, _, HH, WW = weight.shape
    assert (HH, WW) == (3, 3), "reference hardcodes a 3x3 kernel"
    Ho, Wo = H - HH + 1, W - WW + 1          # == H-2, W-2
    K = HH * WW

    x = x.astype(jnp.float32)
    # Only the last input-channel slice of the weights survives the reference
    # loop; only input channel 0 is read (via the BlockSpec below).
    w3 = weight[:, C - 1].reshape(F_out, K).astype(jnp.float32)
    b1 = bias.astype(jnp.float32)

    kernel = functools.partial(
        _conv_cq_kernel, num_filters=F_out, Ho=Ho, Wo=Wo)

    cost = pl.CostEstimate(
        flops=2 * N * F_out * K * Ho * Wo,
        transcendentals=0,
        bytes_accessed=4 * (N * H * W + F_out * K + F_out
                            + N * F_out * Ho * Wo),
    )

    out = pl.pallas_call(
        kernel,
        out_shape=jax.ShapeDtypeStruct((N, F_out, Ho, Wo), jnp.float32),
        grid_spec=pltpu.PrefetchScalarGridSpec(
            num_scalar_prefetch=0,
            grid=(N,),
            in_specs=[
                # Scalar weight/bias tables live in SMEM (read as scalars).
                pl.BlockSpec(memory_space=pltpu.MemorySpace.SMEM),
                pl.BlockSpec(memory_space=pltpu.MemorySpace.SMEM),
                # DMA only channel 0 of batch element n; squeeze N/C dims.
                pl.BlockSpec((None, None, H, W), lambda n: (n, 0, 0, 0)),
            ],
            out_specs=pl.BlockSpec((None, F_out, Ho, Wo),
                                   lambda n: (n, 0, 0, 0)),
        ),
        compiler_params=pltpu.CompilerParams(
            dimension_semantics=("parallel",)),
        cost_estimate=cost,
    )(w3, b1, x)
    return out


def _init_params(key, in_channels, out_channels, kernel_size=3):
    """Deterministic re-implementation of _ConvNd.reset_parameters."""
    kw, kb = jax.random.split(key)
    fan_in = in_channels * kernel_size * kernel_size
    w_bound = math.sqrt(1.0 / fan_in)        # kaiming_uniform_(a=sqrt(5))
    weight = jax.random.uniform(
        kw, (out_channels, in_channels, kernel_size, kernel_size),
        minval=-w_bound, maxval=w_bound, dtype=jnp.float32)
    b_bound = 1.0 / math.sqrt(fan_in)
    bias = jax.random.uniform(
        kb, (out_channels,), minval=-b_bound, maxval=b_bound,
        dtype=jnp.float32)
    return weight, bias


def _reference(x, weight, bias):
    """Pure-JAX replica of the numpy reference for correctness checking."""
    N, C, H, W = x.shape
    F = weight.shape[0]
    Ho, Wo = H - 2, W - 2
    w3 = weight[:, C - 1].reshape(F, 9)
    cols = []
    for c in range(3):
        for d in range(3):
            cols.append(x[:, 0, c:c + Ho, d:d + Wo])
    p = jnp.stack(cols, axis=-1).reshape(N, Ho * Wo, 9)      # (N, P, 9)
    out = jnp.einsum("fk,npk->nfp", w3, p) + bias[None, :, None]
    return out.reshape(N, F, Ho, Wo).astype(jnp.float32)


if __name__ == "__main__":
    key = jax.random.PRNGKey(0)
    k_x, k_p = jax.random.split(key)

    N, C, H, W = 2, 4, 16, 16
    F_out = 4

    x = jax.random.normal(k_x, (N, C, H, W), dtype=jnp.float32)
    weight, bias = _init_params(k_p, C, F_out, kernel_size=3)

    out = conv2d_cq_pallas(x, weight, bias)
    out = jax.block_until_ready(out)

    ref = _reference(x, weight, bias)
    assert out.shape == (N, F_out, H - 2, W - 2), out.shape
    assert out.dtype == jnp.float32
    assert jnp.allclose(out, ref, atol=1e-5, rtol=1e-5), "mismatch vs reference"

    print("KERNEL_OK")
</pallas_src>

<mosaic_0001>
module attributes {stable_mosaic.version = 11 : i64} {
  func.func @_conv_cq_kernel(%arg0: i32, %arg1: memref<4x9xf32, #tpu.memory_space<smem>>, %arg2: memref<4xf32, #tpu.memory_space<smem>>, %arg3: memref<1x1x16x16xf32, #tpu.memory_space<vmem>>, %arg4: memref<1x4x14x14xf32, #tpu.memory_space<vmem>>) attributes {dimension_semantics = [#tpu.dimension_semantics<parallel>], iteration_bounds = array<i64: 2>, scalar_prefetch = 0 : i64, scratch_operands = 0 : i64, tpu.core_type = #tpu.core_type<tc>, window_params = [{transform_indices = @transform_0, window_bounds = array<i64: 4, 9>}, {transform_indices = @transform_1, window_bounds = array<i64: 4>}, {transform_indices = @transform_2, window_bounds = array<i64: 1, 1, 16, 16>}, {transform_indices = @transform_3, window_bounds = array<i64: 1, 4, 14, 14>}]} {
    %c0 = arith.constant 0 : index
    %c0_0 = arith.constant 0 : index
    %c0_1 = arith.constant 0 : index
    %c0_2 = arith.constant 0 : index
    %0 = vector.load %arg3[%c0, %c0_0, %c0_1, %c0_2] : memref<1x1x16x16xf32, #tpu.memory_space<vmem>>, vector<1x1x16x16xf32>
    %1 = vector.shape_cast %0 : vector<1x1x16x16xf32> to vector<16x16xf32>
    %2 = vector.extract_strided_slice %1 {offsets = [0, 0], sizes = [14, 14], strides = [1, 1]} : vector<16x16xf32> to vector<14x14xf32>
    %3 = vector.extract_strided_slice %1 {offsets = [0, 1], sizes = [14, 14], strides = [1, 1]} : vector<16x16xf32> to vector<14x14xf32>
    %4 = vector.extract_strided_slice %1 {offsets = [0, 2], sizes = [14, 14], strides = [1, 1]} : vector<16x16xf32> to vector<14x14xf32>
    %5 = vector.extract_strided_slice %1 {offsets = [1, 0], sizes = [14, 14], strides = [1, 1]} : vector<16x16xf32> to vector<14x14xf32>
    %6 = vector.extract_strided_slice %1 {offsets = [1, 1], sizes = [14, 14], strides = [1, 1]} : vector<16x16xf32> to vector<14x14xf32>
    %7 = vector.extract_strided_slice %1 {offsets = [1, 2], sizes = [14, 14], strides = [1, 1]} : vector<16x16xf32> to vector<14x14xf32>
    %8 = vector.extract_strided_slice %1 {offsets = [2, 0], sizes = [14, 14], strides = [1, 1]} : vector<16x16xf32> to vector<14x14xf32>
    %9 = vector.extract_strided_slice %1 {offsets = [2, 1], sizes = [14, 14], strides = [1, 1]} : vector<16x16xf32> to vector<14x14xf32>
    %10 = vector.extract_strided_slice %1 {offsets = [2, 2], sizes = [14, 14], strides = [1, 1]} : vector<16x16xf32> to vector<14x14xf32>
    %c0_3 = arith.constant 0 : index
    %c0_4 = arith.constant 0 : index
    %11 = memref.load %arg1[%c0_3, %c0_4] : memref<4x9xf32, #tpu.memory_space<smem>>
    %12 = vector.broadcast %11 : f32 to vector<14x14xf32>
    %13 = arith.mulf %2, %12 : vector<14x14xf32>
    %c0_5 = arith.constant 0 : index
    %c1 = arith.constant 1 : index
    %14 = memref.load %arg1[%c0_5, %c1] : memref<4x9xf32, #tpu.memory_space<smem>>
    %15 = vector.broadcast %14 : f32 to vector<14x14xf32>
    %16 = arith.mulf %3, %15 : vector<14x14xf32>
    %17 = arith.addf %13, %16 : vector<14x14xf32>
    %c0_6 = arith.constant 0 : index
    %c2 = arith.constant 2 : index
    %18 = memref.load %arg1[%c0_6, %c2] : memref<4x9xf32, #tpu.memory_space<smem>>
    %19 = vector.broadcast %18 : f32 to vector<14x14xf32>
    %20 = arith.mulf %4, %19 : vector<14x14xf32>
    %21 = arith.addf %17, %20 : vector<14x14xf32>
    %c0_7 = arith.constant 0 : index
    %c3 = arith.constant 3 : index
    %22 = memref.load %arg1[%c0_7, %c3] : memref<4x9xf32, #tpu.memory_space<smem>>
    %23 = vector.broadcast %22 : f32 to vector<14x14xf32>
    %24 = arith.mulf %5, %23 : vector<14x14xf32>
    %25 = arith.addf %21, %24 : vector<14x14xf32>
    %c0_8 = arith.constant 0 : index
    %c4 = arith.constant 4 : index
    %26 = memref.load %arg1[%c0_8, %c4] : memref<4x9xf32, #tpu.memory_space<smem>>
    %27 = vector.broadcast %26 : f32 to vector<14x14xf32>
    %28 = arith.mulf %6, %27 : vector<14x14xf32>
    %29 = arith.addf %25, %28 : vector<14x14xf32>
    %c0_9 = arith.constant 0 : index
    %c5 = arith.constant 5 : index
    %30 = memref.load %arg1[%c0_9, %c5] : memref<4x9xf32, #tpu.memory_space<smem>>
    %31 = vector.broadcast %30 : f32 to vector<14x14xf32>
    %32 = arith.mulf %7, %31 : vector<14x14xf32>
    %33 = arith.addf %29, %32 : vector<14x14xf32>
    %c0_10 = arith.constant 0 : index
    %c6 = arith.constant 6 : index
    %34 = memref.load %arg1[%c0_10, %c6] : memref<4x9xf32, #tpu.memory_space<smem>>
    %35 = vector.broadcast %34 : f32 to vector<14x14xf32>
    %36 = arith.mulf %8, %35 : vector<14x14xf32>
    %37 = arith.addf %33, %36 : vector<14x14xf32>
    %c0_11 = arith.constant 0 : index
    %c7 = arith.constant 7 : index
    %38 = memref.load %arg1[%c0_11, %c7] : memref<4x9xf32, #tpu.memory_space<smem>>
    %39 = vector.broadcast %38 : f32 to vector<14x14xf32>
    %40 = arith.mulf %9, %39 : vector<14x14xf32>
    %41 = arith.addf %37, %40 : vector<14x14xf32>
    %c0_12 = arith.constant 0 : index
    %c8 = arith.constant 8 : index
    %42 = memref.load %arg1[%c0_12, %c8] : memref<4x9xf32, #tpu.memory_space<smem>>
    %43 = vector.broadcast %42 : f32 to vector<14x14xf32>
    %44 = arith.mulf %10, %43 : vector<14x14xf32>
    %45 = arith.addf %41, %44 : vector<14x14xf32>
    %c0_13 = arith.constant 0 : index
    %46 = memref.load %arg2[%c0_13] : memref<4xf32, #tpu.memory_space<smem>>
    %47 = vector.broadcast %46 : f32 to vector<14x14xf32>
    %48 = arith.addf %45, %47 : vector<14x14xf32>
    %c0_14 = arith.constant 0 : index
    %c0_15 = arith.constant 0 : index
    %c0_16 = arith.constant 0 : index
    %c0_17 = arith.constant 0 : index
    %49 = vector.load %arg4[%c0_14, %c0_15, %c0_16, %c0_17] : memref<1x4x14x14xf32, #tpu.memory_space<vmem>>, vector<1x1x14x14xf32>
    %50 = vector.shape_cast %49 : vector<1x1x14x14xf32> to vector<14x14xf32>
    %51 = vector.shape_cast %48 : vector<14x14xf32> to vector<1x1x14x14xf32>
    tpu.vector_store %arg4[%c0_14, %c0_15, %c0_16, %c0_17], %51 {strides = array<i32>} : memref<1x4x14x14xf32, #tpu.memory_space<vmem>>, vector<1x1x14x14xf32>,
    %c1_18 = arith.constant 1 : index
    %c0_19 = arith.constant 0 : index
    %52 = memref.load %arg1[%c1_18, %c0_19] : memref<4x9xf32, #tpu.memory_space<smem>>
    %53 = vector.broadcast %52 : f32 to vector<14x14xf32>
    %54 = arith.mulf %2, %53 : vector<14x14xf32>
    %c1_20 = arith.constant 1 : index
    %c1_21 = arith.constant 1 : index
    %55 = memref.load %arg1[%c1_20, %c1_21] : memref<4x9xf32, #tpu.memory_space<smem>>
    %56 = vector.broadcast %55 : f32 to vector<14x14xf32>
    %57 = arith.mulf %3, %56 : vector<14x14xf32>
    %58 = arith.addf %54, %57 : vector<14x14xf32>
    %c1_22 = arith.constant 1 : index
    %c2_23 = arith.constant 2 : index
    %59 = memref.load %arg1[%c1_22, %c2_23] : memref<4x9xf32, #tpu.memory_space<smem>>
    %60 = vector.broadcast %59 : f32 to vector<14x14xf32>
    %61 = arith.mulf %4, %60 : vector<14x14xf32>
    %62 = arith.addf %58, %61 : vector<14x14xf32>
    %c1_24 = arith.constant 1 : index
    %c3_25 = arith.constant 3 : index
    %63 = memref.load %arg1[%c1_24, %c3_25] : memref<4x9xf32, #tpu.memory_space<smem>>
    %64 = vector.broadcast %63 : f32 to vector<14x14xf32>
    %65 = arith.mulf %5, %64 : vector<14x14xf32>
    %66 = arith.addf %62, %65 : vector<14x14xf32>
    %c1_26 = arith.constant 1 : index
    %c4_27 = arith.constant 4 : index
    %67 = memref.load %arg1[%c1_26, %c4_27] : memref<4x9xf32, #tpu.memory_space<smem>>
    %68 = vector.broadcast %67 : f32 to vector<14x14xf32>
    %69 = arith.mulf %6, %68 : vector<14x14xf32>
    %70 = arith.addf %66, %69 : vector<14x14xf32>
    %c1_28 = arith.constant 1 : index
    %c5_29 = arith.constant 5 : index
    %71 = memref.load %arg1[%c1_28, %c5_29] : memref<4x9xf32, #tpu.memory_space<smem>>
    %72 = vector.broadcast %71 : f32 to vector<14x14xf32>
    %73 = arith.mulf %7, %72 : vector<14x14xf32>
    %74 = arith.addf %70, %73 : vector<14x14xf32>
    %c1_30 = arith.constant 1 : index
    %c6_31 = arith.constant 6 : index
    %75 = memref.load %arg1[%c1_30, %c6_31] : memref<4x9xf32, #tpu.memory_space<smem>>
    %76 = vector.broadcast %75 : f32 to vector<14x14xf32>
    %77 = arith.mulf %8, %76 : vector<14x14xf32>
    %78 = arith.addf %74, %77 : vector<14x14xf32>
    %c1_32 = arith.constant 1 : index
    %c7_33 = arith.constant 7 : index
    %79 = memref.load %arg1[%c1_32, %c7_33] : memref<4x9xf32, #tpu.memory_space<smem>>
    %80 = vector.broadcast %79 : f32 to vector<14x14xf32>
    %81 = arith.mulf %9, %80 : vector<14x14xf32>
    %82 = arith.addf %78, %81 : vector<14x14xf32>
    %c1_34 = arith.constant 1 : index
    %c8_35 = arith.constant 8 : index
    %83 = memref.load %arg1[%c1_34, %c8_35] : memref<4x9xf32, #tpu.memory_space<smem>>
    %84 = vector.broadcast %83 : f32 to vector<14x14xf32>
    %85 = arith.mulf %10, %84 : vector<14x14xf32>
    %86 = arith.addf %82, %85 : vector<14x14xf32>
    %c1_36 = arith.constant 1 : index
    %87 = memref.load %arg2[%c1_36] : memref<4xf32, #tpu.memory_space<smem>>
    %88 = vector.broadcast %87 : f32 to vector<14x14xf32>
    %89 = arith.addf %86, %88 : vector<14x14xf32>
    %c0_37 = arith.constant 0 : index
    %c1_38 = arith.constant 1 : index
    %c0_39 = arith.constant 0 : index
    %c0_40 = arith.constant 0 : index
    %90 = vector.load %arg4[%c0_37, %c1_38, %c0_39, %c0_40] : memref<1x4x14x14xf32, #tpu.memory_space<vmem>>, vector<1x1x14x14xf32>
    %91 = vector.shape_cast %90 : vector<1x1x14x14xf32> to vector<14x14xf32>
    %92 = vector.shape_cast %89 : vector<14x14xf32> to vector<1x1x14x14xf32>
    tpu.vector_store %arg4[%c0_37, %c1_38, %c0_39, %c0_40], %92 {strides = array<i32>} : memref<1x4x14x14xf32, #tpu.memory_space<vmem>>, vector<1x1x14x14xf32>,
    %c2_41 = arith.constant 2 : index
    %c0_42 = arith.constant 0 : index
    %93 = memref.load %arg1[%c2_41, %c0_42] : memref<4x9xf32, #tpu.memory_space<smem>>
    %94 = vector.broadcast %93 : f32 to vector<14x14xf32>
    %95 = arith.mulf %2, %94 : vector<14x14xf32>
    %c2_43 = arith.constant 2 : index
    %c1_44 = arith.constant 1 : index
    %96 = memref.load %arg1[%c2_43, %c1_44] : memref<4x9xf32, #tpu.memory_space<smem>>
    %97 = vector.broadcast %96 : f32 to vector<14x14xf32>
    %98 = arith.mulf %3, %97 : vector<14x14xf32>
    %99 = arith.addf %95, %98 : vector<14x14xf32>
    %c2_45 = arith.constant 2 : index
    %c2_46 = arith.constant 2 : index
    %100 = memref.load %arg1[%c2_45, %c2_46] : memref<4x9xf32, #tpu.memory_space<smem>>
    %101 = vector.broadcast %100 : f32 to vector<14x14xf32>
    %102 = arith.mulf %4, %101 : vector<14x14xf32>
    %103 = arith.addf %99, %102 : vector<14x14xf32>
    %c2_47 = arith.constant 2 : index
    %c3_48 = arith.constant 3 : index
    %104 = memref.load %arg1[%c2_47, %c3_48] : memref<4x9xf32, #tpu.memory_space<smem>>
    %105 = vector.broadcast %104 : f32 to vector<14x14xf32>
    %106 = arith.mulf %5, %105 : vector<14x14xf32>
    %107 = arith.addf %103, %106 : vector<14x14xf32>
    %c2_49 = arith.constant 2 : index
    %c4_50 = arith.constant 4 : index
    %108 = memref.load %arg1[%c2_49, %c4_50] : memref<4x9xf32, #tpu.memory_space<smem>>
    %109 = vector.broadcast %108 : f32 to vector<14x14xf32>
    %110 = arith.mulf %6, %109 : vector<14x14xf32>
    %111 = arith.addf %107, %110 : vector<14x14xf32>
    %c2_51 = arith.constant 2 : index
    %c5_52 = arith.constant 5 : index
    %112 = memref.load %arg1[%c2_51, %c5_52] : memref<4x9xf32, #tpu.memory_space<smem>>
    %113 = vector.broadcast %112 : f32 to vector<14x14xf32>
    %114 = arith.mulf %7, %113 : vector<14x14xf32>
    %115 = arith.addf %111, %114 : vector<14x14xf32>
    %c2_53 = arith.constant 2 : index
    %c6_54 = arith.constant 6 : index
    %116 = memref.load %arg1[%c2_53, %c6_54] : memref<4x9xf32, #tpu.memory_space<smem>>
    %117 = vector.broadcast %116 : f32 to vector<14x14xf32>
    %118 = arith.mulf %8, %117 : vector<14x14xf32>
    %119 = arith.addf %115, %118 : vector<14x14xf32>
    %c2_55 = arith.constant 2 : index
    %c7_56 = arith.constant 7 : index
    %120 = memref.load %arg1[%c2_55, %c7_56] : memref<4x9xf32, #tpu.memory_space<smem>>
    %121 = vector.broadcast %120 : f32 to vector<14x14xf32>
    %122 = arith.mulf %9, %121 : vector<14x14xf32>
    %123 = arith.addf %119, %122 : vector<14x14xf32>
    %c2_57 = arith.constant 2 : index
    %c8_58 = arith.constant 8 : index
    %124 = memref.load %arg1[%c2_57, %c8_58] : memref<4x9xf32, #tpu.memory_space<smem>>
    %125 = vector.broadcast %124 : f32 to vector<14x14xf32>
    %126 = arith.mulf %10, %125 : vector<14x14xf32>
    %127 = arith.addf %123, %126 : vector<14x14xf32>
    %c2_59 = arith.constant 2 : index
    %128 = memref.load %arg2[%c2_59] : memref<4xf32, #tpu.memory_space<smem>>
    %129 = vector.broadcast %128 : f32 to vector<14x14xf32>
    %130 = arith.addf %127, %129 : vector<14x14xf32>
    %c0_60 = arith.constant 0 : index
    %c2_61 = arith.constant 2 : index
    %c0_62 = arith.constant 0 : index
    %c0_63 = arith.constant 0 : index
    %131 = vector.load %arg4[%c0_60, %c2_61, %c0_62, %c0_63] : memref<1x4x14x14xf32, #tpu.memory_space<vmem>>, vector<1x1x14x14xf32>
    %132 = vector.shape_cast %131 : vector<1x1x14x14xf32> to vector<14x14xf32>
    %133 = vector.shape_cast %130 : vector<14x14xf32> to vector<1x1x14x14xf32>
    tpu.vector_store %arg4[%c0_60, %c2_61, %c0_62, %c0_63], %133 {strides = array<i32>} : memref<1x4x14x14xf32, #tpu.memory_space<vmem>>, vector<1x1x14x14xf32>,
    %c3_64 = arith.constant 3 : index
    %c0_65 = arith.constant 0 : index
    %134 = memref.load %arg1[%c3_64, %c0_65] : memref<4x9xf32, #tpu.memory_space<smem>>
    %135 = vector.broadcast %134 : f32 to vector<14x14xf32>
    %136 = arith.mulf %2, %135 : vector<14x14xf32>
    %c3_66 = arith.constant 3 : index
    %c1_67 = arith.constant 1 : index
    %137 = memref.load %arg1[%c3_66, %c1_67] : memref<4x9xf32, #tpu.memory_space<smem>>
    %138 = vector.broadcast %137 : f32 to vector<14x14xf32>
    %139 = arith.mulf %3, %138 : vector<14x14xf32>
    %140 = arith.addf %136, %139 : vector<14x14xf32>
    %c3_68 = arith.constant 3 : index
    %c2_69 = arith.constant 2 : index
    %141 = memref.load %arg1[%c3_68, %c2_69] : memref<4x9xf32, #tpu.memory_space<smem>>
    %142 = vector.broadcast %141 : f32 to vector<14x14xf32>
    %143 = arith.mulf %4, %142 : vector<14x14xf32>
    %144 = arith.addf %140, %143 : vector<14x14xf32>
    %c3_70 = arith.constant 3 : index
    %c3_71 = arith.constant 3 : index
    %145 = memref.load %arg1[%c3_70, %c3_71] : memref<4x9xf32, #tpu.memory_space<smem>>
    %146 = vector.broadcast %145 : f32 to vector<14x14xf32>
    %147 = arith.mulf %5, %146 : vector<14x14xf32>
    %148 = arith.addf %144, %147 : vector<14x14xf32>
    %c3_72 = arith.constant 3 : index
    %c4_73 = arith.constant 4 : index
    %149 = memref.load %arg1[%c3_72, %c4_73] : memref<4x9xf32, #tpu.memory_space<smem>>
    %150 = vector.broadcast %149 : f32 to vector<14x14xf32>
    %151 = arith.mulf %6, %150 : vector<14x14xf32>
    %152 = arith.addf %148, %151 : vector<14x14xf32>
    %c3_74 = arith.constant 3 : index
    %c5_75 = arith.constant 5 : index
    %153 = memref.load %arg1[%c3_74, %c5_75] : memref<4x9xf32, #tpu.memory_space<smem>>
    %154 = vector.broadcast %153 : f32 to vector<14x14xf32>
    %155 = arith.mulf %7, %154 : vector<14x14xf32>
    %156 = arith.addf %152, %155 : vector<14x14xf32>
    %c3_76 = arith.constant 3 : index
    %c6_77 = arith.constant 6 : index
    %157 = memref.load %arg1[%c3_76, %c6_77] : memref<4x9xf32, #tpu.memory_space<smem>>
    %158 = vector.broadcast %157 : f32 to vector<14x14xf32>
    %159 = arith.mulf %8, %158 : vector<14x14xf32>
    %160 = arith.addf %156, %159 : vector<14x14xf32>
    %c3_78 = arith.constant 3 : index
    %c7_79 = arith.constant 7 : index
    %161 = memref.load %arg1[%c3_78, %c7_79] : memref<4x9xf32, #tpu.memory_space<smem>>
    %162 = vector.broadcast %161 : f32 to vector<14x14xf32>
    %163 = arith.mulf %9, %162 : vector<14x14xf32>
    %164 = arith.addf %160, %163 : vector<14x14xf32>
    %c3_80 = arith.constant 3 : index
    %c8_81 = arith.constant 8 : index
    %165 = memref.load %arg1[%c3_80, %c8_81] : memref<4x9xf32, #tpu.memory_space<smem>>
    %166 = vector.broadcast %165 : f32 to vector<14x14xf32>
    %167 = arith.mulf %10, %166 : vector<14x14xf32>
    %168 = arith.addf %164, %167 : vector<14x14xf32>
    %c3_82 = arith.constant 3 : index
    %169 = memref.load %arg2[%c3_82] : memref<4xf32, #tpu.memory_space<smem>>
    %170 = vector.broadcast %169 : f32 to vector<14x14xf32>
    %171 = arith.addf %168, %170 : vector<14x14xf32>
    %c0_83 = arith.constant 0 : index
    %c3_84 = arith.constant 3 : index
    %c0_85 = arith.constant 0 : index
    %c0_86 = arith.constant 0 : index
    %172 = vector.load %arg4[%c0_83, %c3_84, %c0_85, %c0_86] : memref<1x4x14x14xf32, #tpu.memory_space<vmem>>, vector<1x1x14x14xf32>
    %173 = vector.shape_cast %172 : vector<1x1x14x14xf32> to vector<14x14xf32>
    %174 = vector.shape_cast %171 : vector<14x14xf32> to vector<1x1x14x14xf32>
    tpu.vector_store %arg4[%c0_83, %c3_84, %c0_85, %c0_86], %174 {strides = array<i32>} : memref<1x4x14x14xf32, #tpu.memory_space<vmem>>, vector<1x1x14x14xf32>,
    return
  }
  func.func @transform_0(%arg0: i32) -> (i32, i32) {
    %c0_i32 = arith.constant 0 : i32
    %c0_i32_0 = arith.constant 0 : i32
    %c0_i32_1 = arith.constant 0 : i32
    return %c0_i32, %c0_i32_0 : i32, i32
  }
  func.func @transform_1(%arg0: i32) -> i32 {
    %c0_i32 = arith.constant 0 : i32
    %c0_i32_0 = arith.constant 0 : i32
    return %c0_i32 : i32
  }
  func.func @transform_2(%arg0: i32) -> (i32, i32, i32, i32) {
    %c0_i32 = arith.constant 0 : i32
    %c0_i32_0 = arith.constant 0 : i32
    %c0_i32_1 = arith.constant 0 : i32
    %c0_i32_2 = arith.constant 0 : i32
    return %arg0, %c0_i32, %c0_i32_0, %c0_i32_1 : i32, i32, i32, i32
  }
  func.func @transform_3(%arg0: i32) -> (i32, i32, i32, i32) {
    %c0_i32 = arith.constant 0 : i32
    %c0_i32_0 = arith.constant 0 : i32
    %c0_i32_1 = arith.constant 0 : i32
    %c0_i32_2 = arith.constant 0 : i32
    return %arg0, %c0_i32, %c0_i32_0, %c0_i32_1 : i32, i32, i32, i32
  }
}

</mosaic_0001>

<bundles_post_ra>
// kernel: tpu_custom_call.1
= control target key start
LH: loop header
LB: loop body
LE: loop exit
PB: predicated region body
PF: predicated region fallthrough
CT: control target
= control target key end

     0   :  { %8 = vsyncpa [#allocation4], 0  ;;  %s1661_s0 = inlined_call_operand.hbm [shape: f32[4,9], index: 0, kind: input, shape index: {}]   ;;  %s1662_s1 = inlined_call_operand.vmem [shape: f32[4], index: 1, kind: input, shape index: {}]   ;;  %s1663_s2 = inlined_call_operand.hbm [shape: f32[2,4,16,16], index: 2, kind: input, shape index: {}]   ;;  %s1664_s3 = inlined_call_operand.vmem [shape: f32[2,4,14,14], index: 3, kind: output, shape index: {}]  }
   0x1   :  { %9 = vsyncpa [#allocation5], 0 }
   0x2   :  { %10 = vsyncpa [#allocation3], 0 }
   0x3   :  { %12 = vsyncpa [#allocation3 + $0x1], 0  ;;  %s1099_s12 = smov 0   ;;  %s1101_s13 = smov 0  }
   0x4   :  { %s1103_s14 = smov 0   ;;  %s1105_s15 = smov 0  }
   0x5 LB: > { %s1118_s16 = sadd.s32 4294967295, %s1070_s15   ;;  %s1121_s17 = sadd.s32 1, %s1070_s15   ;;  %s1070_s15 = sphi %s1105_s15, %s1679_s15   ;;  %s1066_s14 = sphi %s1103_s14, %s1678_s14   ;;  %s1062_s13 = sphi %s1101_s13, %s1677_s13   ;;  %s1058_s12 = sphi %s1099_s12, %s1676_s12  }
   0x6   : > { %s64_s18 = ssub.s32 %s1070_s15, %s1121_s17  ;;  %s67_s19 = sadd.s32 1, %s1066_s14 }
   0x7   : > { %p65_p0 = scmp.eq.s32.totalorder %s64_s18, 0  ;;  %p74_p1 = scmp.ne.s32.totalorder %s1066_s14, %s1062_s13 }
   0x8   : > { %p75_p2 = scmp.eq.s32.totalorder %s1070_s15, 0  ;;  %p80_p3 = scmp.ne.s32.totalorder %s1062_s13, %s1058_s12 }
   0x9   : > { %s1131_s20 = scalar_select %p65_p0, %s1066_s14, %s67_s19  }
   0xa   : > { %p76_p4 = por %p75_p2, %p74_p1  ;;  %p1665_p5 = scmp.eq.s32.totalorder %s1118_s16, 0 }
   0xb   : > { %p845_p6 = scmp.ge.s32.totalorder %s1070_s15, 1  ;;  %p117_p7 = scmp.lt.s32.totalorder %s1070_s15, 3 }
   0xc   : > { %p1138_p8 = por %p1665_p5, %p80_p3  ;;  %p929_p10 = scmp.lt.s32.totalorder %s1070_s15, 2 }
   0xd   : > { %p1142_p9 = pnand %p845_p6, %p117_p7  ;;  %s139_s25 = sshll.u32 %s1662_s1, 4  ;;  %s140_s25 = int_to_ptr.vmem [resolvable:$true] %s139_s25 }
   0xe   : > { %s1667_s21 = scalar_select %p1138_p8, 1, 0 }
   0xf   : > { %p916_p11 = pneg %p1142_p9  ;;  %p1152_p12 = pnand %p929_p10, %p76_p4 }
  0x10   : > { %s150_s28 = sand.u32 1, %s1066_s14   ;;  %s970_s4 = scalar_lea.hbm %s1661_s0, 64 }
  0x11   : > { %p1158_p13 = pnand %p916_p11, %p1665_p5  ;;  %p971_p0 = scmp.ne.s32.totalorder %s1661_s0, %s970_s4 }
  0x12   : > { %p977_p4 = scmp.lt.u32.totalorder %s970_s4, %s1661_s0 }
  0x13   : > { %p972_p1 = pneg %p1158_p13 }
  0x15   : > { %p973_p2 = pnand %p972_p1, %p971_p0 }
  0x17   : > { %p974_p3 = pneg %p973_p2 }
  0x19   : > { %p979_p6 = pnand %p977_p4, %p974_p3 }
  0x1b   : > { %982 = shalt.err (!%p979_p6)
}
  0x1c   : > { %s1072_s9 = smov [#allocation2]   ;;  %s983_s12 = scalar_lea.vmem %s140_s25, 16 }
  0x1d   : > { %919 = dma.hbm_to_smem (!%p1158_p13), %s1661_s0, 64, %s1072_s9, [#allocation4]  }
  0x1e   : > { %p984_p7 = scmp.ne.s32.totalorder %s140_s25, %s983_s12  ;;  %p991_p5 = scmp.lt.s32.totalorder %s140_s25, %s140_s25 }
  0x1f   : > { %p992_p0 = scmp.lt.s32.totalorder %s983_s12, %s983_s12 }
  0x20   : > { %p986_p10 = pnand %p984_p7, %p972_p1 }
  0x21   : > { %p993_p2 = por %p992_p0, %p991_p5 }
  0x22   : > { %p987_p11 = pneg %p986_p10 }
  0x24   : > { %p994_p8 = pnand %p993_p2, %p987_p11 }
  0x26   : > { %997 = shalt.err (!%p994_p8)
}
  0x27   : > { %s1073_s18 = smov [#allocation6]   ;;  %s849_s19 = sshll.u32 %s150_s28, 4 }
  0x28   : > { %922 = dma.vmem_to_smem (!%p1158_p13), %s140_s25, 16, %s1073_s18, [#allocation5]  }
  0x29   : > { %s904_s23 = sshll.u32 %s1070_s15, 10  ;;  %s154_s4 = scalar_lea.vmem [#allocation7], %s849_s19 }
  0x2a   : > { %s1185_s30 = scalar_lea.hbm %s1663_s2, %s904_s23  ;;  %s161_s5 = sshll.u32 %s154_s4, 4  ;;  %s1187_s5 = int_to_ptr.vmem [resolvable:$true] %s161_s5 }
  0x2b   : > { %s1189_s27 = scalar_lea.sflag [#allocation3], %s150_s28  ;;  %s998_s6 = scalar_lea.hbm %s1185_s30, 256 }
  0x2c   : > { %p999_p5 = scmp.ne.s32.totalorder %s1185_s30, %s998_s6  ;;  %p1000_p8 = pneg %p1152_p12 }
  0x2d   : > { %s1003_s7 = scalar_lea.hbm %s1663_s2, 2048  ;;  %p1004_p3 = scmp.lt.u32.totalorder %s1185_s30, %s1663_s2 }
  0x2e   : > { %p1001_p13 = pnand %p1000_p8, %p999_p5  ;;  %p1005_p4 = scmp.lt.u32.totalorder %s1003_s7, %s998_s6 }
  0x2f   : > { %p1007_p7 = scmp.lt.u32.totalorder %s998_s6, %s1185_s30 }
  0x30   : > { %p1002_p1 = pneg %p1001_p13  ;;  %p1006_p6 = por %p1005_p4, %p1004_p3 }
  0x32   : > { %p1008_p10 = por %p1007_p7, %p1006_p6 }
  0x34   : > { %p1009_p11 = pnand %p1008_p10, %p1002_p1 }
  0x36   : > { %1012 = shalt.err (!%p1009_p11)
}
  0x37   : > { %s1013_s28 = scalar_lea.vmem %s1187_s5, 256  ;;  %s1074_s10 = smov [#allocation7]  }
  0x38   : > { %p1014_p0 = scmp.ne.s32.totalorder %s1187_s5, %s1013_s28  ;;  %s1018_s11 = sshll.u32 %s1074_s10, 4  ;;  %s1019_s11 = int_to_ptr.vmem [resolvable:$false] %s1018_s11 }
  0x39   : > { %s1020_s12 = scalar_lea.vmem %s1019_s11, 512  ;;  %p1021_p13 = scmp.lt.s32.totalorder %s1187_s5, %s1019_s11 }
  0x3a   : > { %p1016_p2 = pnand %p1014_p0, %p1000_p8  ;;  %p1022_p3 = scmp.lt.s32.totalorder %s1020_s12, %s1013_s28 }
  0x3c   : > { %p1017_p5 = pneg %p1016_p2  ;;  %p1023_p4 = por %p1022_p3, %p1021_p13 }
  0x3e   : > { %p1024_p6 = pnand %p1023_p4, %p1017_p5 }
  0x40   : > { %1027 = shalt.err (!%p1024_p6)
}
  0x41   : > { %s1075_s18 = smov 128   ;;  %s1076_s19 = smov 8  }
  0x42   : > { %926 = dma.hbm_to_vmem [thread:$0]  (!%p1152_p12), %s1185_s30, 256, %s1187_s5, %s1189_s27, %s1075_s18, %s1075_s18, %s1076_s19  }
  0x43   : > { %173 = sbr.rel (%p1142_p9) target bundleno = 307 (0x133), region = 32  ;;  %p1671_p8 = scmp.eq.s32.totalorder (!%p1142_p9), %s1118_s16, 0 }
  0x4a   : > { %1045 = dma.done.wait (%p1671_p8), [#allocation4], 64   ;;  %p1672_p1 = pmov %p1671_p8 }
  0x4c   : > { %1047 = vsyncadd (%p1672_p1), [#allocation4], 4294967232  ;;  %p1673_p7 = pmov %p1672_p1 }
  0x4d   : > { %p1674_p10 = pmov %p1672_p1 }
  0x4e   : > { %1049 = dma.done.wait (%p1673_p7), [#allocation5], 16  }
  0x4f   : > { %1051 = vsyncadd (%p1674_p10), [#allocation5], 4294967280  ;;  %s183_s23 = sand.u32 1, %s1062_s13   ;;  %p1675_p12 = scmp.ne.s32.totalorder %s1667_s21, 0 }
  0x50   : > { %s855_s26 = sshll.u32 %s183_s23, 4  ;;  %s184_s24 = scalar_lea.sflag [#allocation3], %s183_s23 }
  0x51   : > { %s187_s29 = scalar_lea.vmem [#allocation7], %s855_s26 }
  0x52   : > { %1053 = dma.done.wait (%p1675_p12), %s184_s24, 256  }
  0x53   : > { %1055 = vsyncadd (%p1675_p12), %s184_s24, 4294967040 }
  0x54   : > { %192 = sfence }
  0x55   : > { %s859_s22 = sld [smem:[#allocation2 + $0x2]]  ;;  %s858_s30 = sld [smem:[#allocation2 + $0x1]]  ;;  %v1232_v0 = vld [vmem:[%s187_s29] sm:$0xff]  ;;  %v1234_v1 = vld [vmem:[%s187_s29 + $0x8] sm:$0xff]  ;;  %vm256_vm0 = vcmask 1046528   ;;  %vm304_vm1 = vcmask 1045504  }
  0x56   : > { %s861_s4 = sld [smem:[#allocation2 + $0x4]]  ;;  %s862_s5 = sld [smem:[#allocation2 + $0x5]]  ;;  %vm352_vm2 = vcmask 111616   ;;  %vm350_vm3 = vcmask 113664  }
  0x57   : > { %s864_s27 = sld [smem:[#allocation2 + $0x7]]  ;;  %s1077_s21 = smov 126  }
  0x58   : > { %s1078_s6 = smov 127   ;;  %s1248_s15 = sld [smem:[#allocation2 + $0x81]] }
  0x59   : > { %s879_s25 = sld [smem:[#allocation2 + $0x101]]  ;;  %s885_s8 = sld [smem:[#allocation2 + $0x107]] }
  0x5a   : > { %s1254_s7 = sld [smem:[#allocation2 + $0x181]]  ;;  %s1257_s9 = sld [smem:[#allocation2 + $0x82]] }
  0x5b   : > { %v237_v2 = vstv %s859_s22  ;;  %v223_v4 = vstv %s858_s30  ;;  %s1260_s28 = sld [smem:[#allocation2 + $0x187]]  ;;  %s1262_s10 = sld [smem:[#allocation2 + $0x8]] }
  0x5c   : > { %v238_v3 = vmul.f32 %v237_v2, %v1232_v0  ;;  %v224_v5 = vmul.f32 %v223_v4, %v1232_v0  ;;  %v265_v6 = vstv %s861_s4  ;;  %v282_v7 = vstv %s862_s5  ;;  %s1268_s11 = sld [smem:[#allocation2 + $0x88]]  ;;  %s1282_s19 = sld [smem:[#allocation2 + $0x102]] }
  0x5d   : > { %v239_v8 = vmul.f32 %v237_v2, %v1234_v1  ;;  %v266_v9 = vmul.f32 %v265_v6, %v1232_v0  ;;  %v267_v10 = vmul.f32 %v265_v6, %v1234_v1  ;;  %v225_v11 = vmul.f32 %v223_v4, %v1234_v1  ;;  %s1270_s12 = sld [smem:[#allocation2 + $0x108]]  ;;  %s1292_s23 = sld [smem:[#allocation2 + $0x3]] }
  0x5e   : > { %242 = vrot.lane.b32.xlu1 %v238_v3, %s1077_s21  ;;  %228 = vrot.lane.b32.xlu0 %v224_v5, %s1078_s6  ;;  %v284_v12 = vmul.f32 %v282_v7, %v1234_v1  ;;  %v283_v15 = vmul.f32 %v282_v7, %v1232_v0  ;;  %v313_v16 = vstv %s864_s27  ;;  %v359_v25 = vstv %s1248_s15  ;;  %s1275_s18 = sld [smem:[#allocation2 + $0x188]]  ;;  %s1294_s26 = sld [smem:[#allocation2 + $0x6]] }
  0x5f   : > { %v271_v13 = vrot.slane %v267_v10, 1  ;;  %v270_v14 = vrot.slane %v266_v9, 1  ;;  %v314_v20 = vmul.f32 %v313_v16, %v1232_v0  ;;  %v315_v21 = vmul.f32 %v313_v16, %v1234_v1  ;;  %s1298_s24 = sld [smem:[#allocation2 + $0x182]]  ;;  %s1304_s29 = sld [smem:[#allocation2 + $0x84]] }
  0x60   : > { %v288_v17 = vrot.slane %v284_v12, 1  ;;  %v287_v19 = vrot.slane %v283_v15, 1  ;;  %v492_v27 = vstv %s879_s25  ;;  %v361_v28 = vmul.f32 %v359_v25, %v1234_v1  ;;  %s1324_s22 = sld [smem:[#allocation2 + $0x104]]  ;;  %s1346_s30 = sld [smem:[#allocation2 + $0x83]] }
  0x61   : > { %v272_v18 = vsel %vm256_vm0, %v270_v14, %v271_v13  ;;  %v319_v23 = vrot.slane %v315_v21, 2  ;;  %v318_v24 = vrot.slane %v314_v20, 2  ;;  %v625_v29 = vstv %s1254_s7  ;;  %s1348_s4 = sld [smem:[#allocation2 + $0x103]]  ;;  %s1350_s5 = sld [smem:[#allocation2 + $0x184]] }
  0x62   : > { %244 = vrot.lane.b32.xlu1 %v239_v8, %s1077_s21  ;;  %230 = vrot.lane.b32.xlu0 %v225_v11, %s1078_s6  ;;  %v289_v22 = vsel %vm256_vm0, %v287_v19, %v288_v17  ;;  %v580_v30 = vstv %s885_s8  ;;  %v360_v31 = vmul.f32 %v359_v25, %v1232_v0  ;;  %v373_v32 = vstv %s1257_s9  ;;  %s1360_s27 = sld [smem:[#allocation2 + $0x183]]  ;;  %s1415_s15 = sld [smem:[#allocation2 + $0x86]] }
  0x63   : > { %v320_v26 = vsel %vm304_vm1, %v318_v24, %v319_v23  ;;  %v494_v33 = vmul.f32 %v492_v27, %v1234_v1  ;;  %v493_v34 = vmul.f32 %v492_v27, %v1232_v0  ;;  %v581_v35 = vmul.f32 %v580_v30, %v1232_v0  ;;  %s1417_s25 = sld [smem:[#allocation2 + $0x85]]  ;;  %s884_s8 = sld [smem:[#allocation2 + $0x106]] }
  0x64   : > { %v1286_v36 = vmul.f32 %v580_v30, %v1234_v1  ;;  %v627_v37 = vmul.f32 %v625_v29, %v1234_v1  ;;  %v626_v38 = vmul.f32 %v625_v29, %v1232_v0  ;;  %v713_v39 = vstv %s1260_s28  ;;  %s1429_s7 = sld [smem:[#allocation2 + $0x105]]  ;;  %s896_s28 = sld [smem:[#allocation2 + $0x186]] }
  0x65   : > { %v330_v40 = vstv %s1262_s10  ;;  %v375_v41 = vmul.f32 %v373_v32, %v1234_v1  ;;  %v585_v43 = vrot.slane %v581_v35, 2  ;;  %v714_v44 = vmul.f32 %v713_v39, %v1232_v0  ;;  %s1465_s9 = sld [smem:[#allocation2 + $0x185]]  ;;  %s1484_s10 = sld [smem:[#allocation2 + $0x87]] }
  0x66   : > { %275 = vrot.lane.b32.xlu1 %v271_v13, %s1078_s6  ;;  %273 = vrot.lane.b32.xlu0 %v272_v18, %s1078_s6  ;;  %v586_v42 = vrot.slane %v1286_v36, 2  ;;  %v374_v45 = vmul.f32 %v373_v32, %v1232_v0  ;;  %v1307_v46 = vmul.f32 %v713_v39, %v1234_v1  ;;  %v331_v47 = vmul.f32 %v330_v40, %v1232_v0  ;;  %p211_p9 = scmp.lt.s32.totalorder %s1118_s16, 1 }
  0x67   : > { %v1311_v48 = vmul.f32 %v330_v40, %v1234_v1  ;;  %v718_v50 = vrot.slane %v714_v44, 2  ;;  %v464_v51 = vstv %s1268_s11  ;;  %v597_v52 = vstv %s1270_s12  ;;  %s1575_s11 = sld [smem:[#allocation2 + $0x100]] }
  0x68   : > { %v1316_v49 = vsel %vm304_vm1, %v585_v43, %v586_v42  ;;  %v719_v53 = vrot.slane %v1307_v46, 2  ;;  %v335_v55 = vrot.slane %v331_v47, 2  ;;  %v465_v56 = vmul.f32 %v464_v51, %v1232_v0  ;;  %s1578_s12 = sld [smem:[#allocation2 + $0x180]]  ;;  %s1681_s16 = smov (!%p211_p9, %s1118_s16), 1 }
  0x69   : > { %v336_v54 = vrot.slane %v1311_v48, 2  ;;  %v1327_v57 = vmul.f32 %v464_v51, %v1234_v1  ;;  %v598_v58 = vmul.f32 %v597_v52, %v1232_v0  ;;  %v1331_v59 = vmul.f32 %v597_v52, %v1234_v1 }
  0x6a   : > { %292 = vrot.lane.b32.xlu1 %v288_v17, %s1077_s21  ;;  %290 = vrot.lane.b32.xlu0 %v289_v22, %s1077_s21  ;;  %v730_v60 = vstv %s1275_s18  ;;  %v1338_v61 = vsel %vm304_vm1, %v718_v50, %v719_v53  ;;  %v469_v63 = vrot.slane %v465_v56, 2  ;;  %v506_v7 = vstv %s1282_s19  ;;  %s1597_s18 = sld [smem:[#allocation6]]  ;;  %s1602_s19 = sld [smem:[#allocation6 + $0x1]] }
  0x6b   : > { %v1343_v62 = vsel %vm304_vm1, %v335_v55, %v336_v54  ;;  %v731_v2 = vmul.f32 %v730_v60, %v1232_v0  ;;  %v470_v3 = vrot.slane %v1327_v57, 2  ;;  %v603_v4 = vrot.slane %v1331_v59, 2 }
  0x6c   : > { %v602_v5 = vrot.slane %v598_v58, 2  ;;  %v1355_v6 = vmul.f32 %v730_v60, %v1234_v1  ;;  %v251_v9 = vstv %s1292_s23  ;;  %v299_v10 = vstv %s1294_s26  ;;  %s905_s23 = sshll.u32 %s1681_s16, 6  ;;  %s1611_s26 = sld [smem:[#allocation6 + $0x2]] }
  0x6d   : > { %v735_v8 = vrot.slane %v731_v2, 2  ;;  %v639_v11 = vstv %s1298_s24  ;;  %v1367_v12 = vsel %vm304_vm1, %v469_v63, %v470_v3  ;;  %v400_v15 = vstv %s1304_s29  ;;  %s1620_s29 = scalar_lea.vmem %s1664_s3, %s905_s23 }
  0x6e   : > { %323 = vrot.lane.b32.xlu1 %v319_v23, %s1078_s6  ;;  %321 = vrot.lane.b32.xlu0 %v320_v26, %s1078_s6  ;;  %v1372_v13 = vsel %vm304_vm1, %v602_v5, %v603_v4  ;;  %v736_v14 = vrot.slane %v1355_v6, 2  ;;  %v252_v16 = vmul.f32 %v251_v9, %v1232_v0  ;;  %v1379_v17 = vmul.f32 %v251_v9, %v1234_v1 }
  0x6f   : > { %v300_v18 = vmul.f32 %v299_v10, %v1232_v0  ;;  %v508_v19 = vmul.f32 %v506_v7, %v1234_v1  ;;  %v1389_v21 = vmul.f32 %v299_v10, %v1234_v1  ;;  %v507_v22 = vmul.f32 %v506_v7, %v1232_v0 }
  0x70   : > { %v1386_v20 = vsel %vm304_vm1, %v735_v8, %v736_v14  ;;  %v257_v23 = vrot.slane %v252_v16, 1  ;;  %v258_v24 = vrot.slane %v1379_v17, 1  ;;  %v641_v26 = vmul.f32 %v639_v11, %v1234_v1 }
  0x71   : > { %v305_v25 = vrot.slane %v300_v18, 2  ;;  %v640_v27 = vmul.f32 %v639_v11, %v1232_v0  ;;  %v306_v29 = vrot.slane %v1389_v21, 2  ;;  %v533_v30 = vstv %s1324_s22  ;;  %s1623_s22 = sld [smem:[#allocation6 + $0x3]] }
  0x72   : > { %366 = vrot.lane.b32.xlu1 %v361_v28, %s1078_s6  ;;  %364 = vrot.lane.b32.xlu0 %v360_v31, %s1078_s6  ;;  %v401_v28 = vmul.f32 %v400_v15, %v1232_v0  ;;  %v1403_v31 = vsel %vm256_vm0, %v257_v23, %v258_v24  ;;  %v387_v32 = vstv %s1346_s30  ;;  %v666_v35 = vstv %s1350_s5 }
  0x73   : > { %v1420_v39 = vmul.f32 %v387_v32, %v1234_v1  ;;  %v653_v43 = vstv %s1360_s27  ;;  %v534_v44 = vmul.f32 %v533_v30, %v1232_v0  ;;  %v535_v51 = vmul.f32 %v533_v30, %v1234_v1 }
  0x74   : > { %v654_v47 = vmul.f32 %v653_v43, %v1232_v0  ;;  %v1433_v50 = vmul.f32 %v653_v43, %v1234_v1  ;;  %v405_v60 = vrot.slane %v401_v28, 1  ;;  %v668_v8 = vmul.f32 %v666_v35, %v1234_v1 }
  0x75   : > { %v393_v52 = vrot.slane %v1420_v39, 1  ;;  %v434_v10 = vstv %s1415_s15  ;;  %v667_v11 = vmul.f32 %v666_v35, %v1232_v0  ;;  %v417_v23 = vstv %s1417_s25 }
  0x76   : > { %499 = vrot.lane.b32.xlu1 %v494_v33, %s1078_s6  ;;  %497 = vrot.lane.b32.xlu0 %v493_v34, %s1078_s6  ;;  %v520_v33 = vstv %s1348_s4  ;;  %v402_v34 = vmul.f32 %v400_v15, %v1234_v1  ;;  %v658_v63 = vrot.slane %v654_v47, 1  ;;  %v659_v2 = vrot.slane %v1433_v50, 1 }
  0x77   : > { %v521_v40 = vmul.f32 %v520_v33, %v1232_v0  ;;  %v435_v15 = vmul.f32 %v434_v10, %v1232_v0  ;;  %v1462_v16 = vmul.f32 %v434_v10, %v1234_v1  ;;  %v550_v28 = vstv %s1429_s7 }
  0x78   : > { %v406_v58 = vrot.slane %v402_v34, 1  ;;  %v1455_v9 = vsel %vm256_vm0, %v658_v63, %v659_v2  ;;  %v567_v30 = vstv %s884_s8  ;;  %v419_v43 = vmul.f32 %v417_v23, %v1234_v1 }
  0x79   : > { %v525_v55 = vrot.slane %v521_v40, 1  ;;  %v568_v34 = vmul.f32 %v567_v30, %v1232_v0  ;;  %v1479_v35 = vmul.f32 %v567_v30, %v1234_v1  ;;  %v418_v40 = vmul.f32 %v417_v23, %v1232_v0 }
  0x7a   : > { %632 = vrot.lane.b32.xlu1 %v627_v37, %s1078_s6  ;;  %630 = vrot.lane.b32.xlu0 %v626_v38, %s1078_s6  ;;  %v1412_v37 = vsel %vm304_vm1, %v305_v25, %v306_v29  ;;  %v388_v38 = vmul.f32 %v387_v32, %v1232_v0  ;;  %v407_v18 = vsel %vm256_vm0, %v405_v60, %v406_v58  ;;  %v439_v25 = vrot.slane %v435_v15, 2 }
  0x7b   : > { %v671_v32 = vrot.slane %v667_v11, 1  ;;  %v551_v47 = vmul.f32 %v550_v28, %v1232_v0  ;;  %v422_v10 = vrot.slane %v418_v40, 1  ;;  %v552_v11 = vmul.f32 %v550_v28, %v1234_v1 }
  0x7c   : > { %v683_v15 = vstv %s1465_s9 }
  0x7d   : > { %v556_v30 = vrot.slane %v552_v11, 1  ;;  %v685_v28 = vmul.f32 %v683_v15, %v1234_v1 }
  0x7e   : > { %380 = vrot.lane.b32.xlu1 %v375_v41, %s1077_s21  ;;  %378 = vrot.lane.b32.xlu0 %v374_v45, %s1077_s21  ;;  %v1424_v41 = vmul.f32 %v520_v33, %v1234_v1  ;;  %v392_v45 = vrot.slane %v388_v38, 1 }
  0x7f   : > { %v689_v40 = vrot.slane %v685_v28, 1 }
  0x80   : > { %v526_v56 = vrot.slane %v1424_v41, 1  ;;  %v1443_v5 = vsel %vm256_vm0, %v392_v45, %v393_v52  ;;  %v573_v45 = vrot.slane %v1479_v35, 2 }
  0x82   : > { %513 = vrot.lane.b32.xlu1 %v508_v19, %s1077_s21  ;;  %511 = vrot.lane.b32.xlu0 %v507_v22, %s1077_s21  ;;  %v1448_v7 = vsel %vm256_vm0, %v525_v55, %v526_v56  ;;  %v539_v19 = vrot.slane %v535_v51, 1  ;;  %v538_v22 = vrot.slane %v534_v44, 1  ;;  %v572_v44 = vrot.slane %v568_v34, 2 }
  0x83   : > { %v700_v51 = vstv %s896_s28  ;;  %v447_v34 = vstv %s1484_s10 }
  0x84   : > { %v540_v38 = vsel %vm256_vm0, %v538_v22, %v539_v19  ;;  %v701_v60 = vmul.f32 %v700_v51, %v1232_v0  ;;  %v1498_v63 = vmul.f32 %v700_v51, %v1234_v1  ;;  %v684_v22 = vmul.f32 %v683_v15, %v1232_v0 }
  0x86   : > { %646 = vrot.lane.b32.xlu1 %v641_v26, %s1077_s21  ;;  %644 = vrot.lane.b32.xlu0 %v640_v27, %s1077_s21  ;;  %v440_v26 = vrot.slane %v1462_v16, 2  ;;  %v672_v27 = vrot.slane %v668_v8, 1  ;;  %v423_v8 = vrot.slane %v419_v43, 1  ;;  %v448_v43 = vmul.f32 %v447_v34, %v1232_v0 }
  0x87   : > { %v481_v16 = vstv %s1602_s19 }
  0x88   : > { %v1475_v33 = vsel %vm304_vm1, %v439_v25, %v440_v26  ;;  %v673_v55 = vsel %vm256_vm0, %v671_v32, %v672_v27  ;;  %v424_v25 = vsel %vm256_vm0, %v422_v10, %v423_v8  ;;  %v555_v32 = vrot.slane %v551_v47, 1 }
  0x8a   : > { %410 = vrot.lane.b32.xlu1 %v406_v58, %s1078_s6  ;;  %408 = vrot.lane.b32.xlu0 %v407_v18, %s1078_s6  ;;  %v1494_v58 = vsel %vm304_vm1, %v572_v44, %v573_v45  ;;  %v705_v18 = vrot.slane %v701_v60, 2  ;;  %v449_v44 = vmul.f32 %v447_v34, %v1234_v1 }
  0x8c   : > { %v453_v51 = vrot.slane %v449_v44, 2 }
  0x8e   : > { %543 = vrot.lane.b32.xlu1 %v539_v19, %s1078_s6  ;;  %541 = vrot.lane.b32.xlu0 %v540_v38, %s1078_s6  ;;  %v706_v19 = vrot.slane %v1498_v63, 2  ;;  %v557_v38 = vsel %vm256_vm0, %v555_v32, %v556_v30 }
  0x90   : > { %v1509_v23 = vsel %vm304_vm1, %v705_v18, %v706_v19 }
  0x92   : > { %676 = vrot.lane.b32.xlu1 %v672_v27, %s1078_s6  ;;  %674 = vrot.lane.b32.xlu0 %v673_v55, %s1078_s6  ;;  %v688_v27 = vrot.slane %v684_v22, 1  ;;  %v452_v55 = vrot.slane %v448_v43, 2 }
  0x94   : > { %v690_v47 = vsel %vm256_vm0, %v688_v27, %v689_v40  ;;  %v454_v60 = vsel %vm304_vm1, %v452_v55, %v453_v51 }
  0x96   : > { %427 = vrot.lane.b32.xlu1 %v423_v8, %s1077_s21  ;;  %425 = vrot.lane.b32.xlu0 %v424_v25, %s1077_s21 }
  0x9a   : > { %560 = vrot.lane.b32.xlu1 %v556_v30, %s1077_s21  ;;  %558 = vrot.lane.b32.xlu0 %v557_v38, %s1077_s21 }
  0x9e   : > { %693 = vrot.lane.b32.xlu1 %v689_v40, %s1077_s21  ;;  %691 = vrot.lane.b32.xlu0 %v690_v47, %s1077_s21  ;;  %v621_v40 = vstv %s1578_s12 }
  0xa2   : > { %457 = vrot.lane.b32.xlu1 %v453_v51, %s1078_s6  ;;  %455 = vrot.lane.b32.xlu0 %v454_v60, %s1078_s6  ;;  %v622_v51 = vmul.f32 %v621_v40, %v1232_v0 }
  0xa6   : > { %590 = vrot.lane.b32.xlu1 %v586_v42, %s1078_s6  ;;  %588 = vrot.lane.b32.xlu0 %v1316_v49, %s1078_s6 }
  0xaa   : > { %723 = vrot.lane.b32.xlu1 %v719_v53, %s1078_s6  ;;  %721 = vrot.lane.b32.xlu0 %v1338_v61, %s1078_s6  ;;  %s218_s6 = sld [smem:[#allocation2]] }
  0xae   : > { %340 = vrot.lane.b32.xlu1 %v336_v54, %s1077_s21  ;;  %338 = vrot.lane.b32.xlu0 %v1343_v62, %s1077_s21 }
  0xb0   : > { %v219_v36 = vstv %s218_s6 }
  0xb1   : > { %v220_v42 = vmul.f32 %v219_v36, %v1232_v0  ;;  %v221_v53 = vmul.f32 %v219_v36, %v1234_v1 }
  0xb2   : > { %474 = vrot.lane.b32.xlu1 %v470_v3, %s1077_s21  ;;  %472 = vrot.lane.b32.xlu0 %v1367_v12, %s1077_s21 }
  0xb6   : > { %607 = vrot.lane.b32.xlu1 %v603_v4, %s1077_s21  ;;  %605 = vrot.lane.b32.xlu0 %v1372_v13, %s1077_s21 }
  0xba   : > { %740 = vrot.lane.b32.xlu1 %v736_v14, %s1077_s21  ;;  %738 = vrot.lane.b32.xlu0 %v1386_v20, %s1077_s21  ;;  %s1573_s21 = sld [smem:[#allocation2 + $0x80]] }
  0xc0   : > { %v355_v30 = vstv %s1573_s21 }
  0xc1   : > { %v356_v21 = vmul.f32 %v355_v30, %v1232_v0 }
  0xd0   : > { %v243_v46 = vpop.permute.xlu1 %242  ;;  %v229_v48 = vpop.permute.xlu0 %228 }
  0xd1   : > { %v234_v49 = vadd.f32 %v229_v48, %v220_v42 }
  0xd3   : > { %v248_v54 = vadd.f32 %v243_v46, %v234_v49 }
  0xd4   : > { %v245_v57 = vpop.permute.xlu1 %244  ;;  %v231_v59 = vpop.permute.xlu0 %230 }
  0xd5   : > { %v235_v61 = vadd.f32 %v231_v59, %v221_v53  ;;  %v262_v62 = vadd.f32 %v1403_v31, %v248_v54 }
  0xd7   : > { %v249_v3 = vadd.f32 %v245_v57, %v235_v61 }
  0xd8   : > { %v276_v4 = vpop.permute.xlu1 %275  ;;  %v274_v6 = vpop.permute.xlu0 %273 }
  0xd9   : > { %v263_v12 = vadd.f32 %v258_v24, %v249_v3  ;;  %v279_v13 = vadd.f32 %v274_v6, %v262_v62 }
  0xdb   : > { %v280_v14 = vadd.f32 %v276_v4, %v263_v12 }
  0xdc   : > { %v293_v20 = vpop.permute.xlu1 %292  ;;  %v291_v8 = vpop.permute.xlu0 %290 }
  0xdd   : > { %v297_v10 = vadd.f32 %v293_v20, %v280_v14  ;;  %v296_v11 = vadd.f32 %v291_v8, %v279_v13 }
  0xdf   : > { %v1566_v18 = vadd.f32 %v306_v29, %v297_v10  ;;  %v1569_v31 = vadd.f32 %v1412_v37, %v296_v11  ;;  %v488_v37 = vstv %s1575_s11  ;;  %v357_v11 = vmul.f32 %v355_v30, %v1234_v1 }
  0xe0   : > { %v1562_v15 = vpop.permute.xlu1 %323  ;;  %v1571_v22 = vpop.permute.xlu0 %321  ;;  %v489_v27 = vmul.f32 %v488_v37, %v1232_v0 }
  0xe1   : > { %v327_v39 = vadd.f32 %v1571_v22, %v1569_v31 }
  0xe4   : > { %v367_v17 = vpop.permute.xlu1 %366  ;;  %v365_v24 = vpop.permute.xlu0 %364 }
  0xe5   : > { %v370_v34 = vadd.f32 %v365_v24, %v356_v21 }
  0xe8   : > { %v500_v25 = vpop.permute.xlu1 %499  ;;  %v498_v32 = vpop.permute.xlu0 %497 }
  0xe9   : > { %v503_v47 = vadd.f32 %v498_v32, %v489_v27  ;;  %v490_v27 = vmul.f32 %v488_v37, %v1234_v1 }
  0xec   : > { %v633_v29 = vpop.permute.xlu1 %632  ;;  %v631_v28 = vpop.permute.xlu0 %630 }
  0xed   : > { %v636_v46 = vadd.f32 %v631_v28, %v622_v51  ;;  %v504_v51 = vadd.f32 %v500_v25, %v490_v27 }
  0xf0   : > { %v381_v38 = vpop.permute.xlu1 %380  ;;  %v379_v43 = vpop.permute.xlu0 %378 }
  0xf1   : > { %v384_v44 = vadd.f32 %v379_v43, %v370_v34  ;;  %v371_v34 = vadd.f32 %v367_v17, %v357_v11  ;;  %v747_v11 = vstv %s1623_s22 }
  0xf3   : > { %v397_v60 = vadd.f32 %v1443_v5, %v384_v44 }
  0xf4   : > { %v514_v55 = vpop.permute.xlu1 %513  ;;  %v512_v36 = vpop.permute.xlu0 %511 }
  0xf5   : > { %v517_v42 = vadd.f32 %v512_v36, %v503_v47 }
  0xf7   : > { %v530_v49 = vadd.f32 %v1448_v7, %v517_v42 }
  0xf8   : > { %v647_v48 = vpop.permute.xlu1 %646  ;;  %v645_v53 = vpop.permute.xlu0 %644 }
  0xf9   : > { %v650_v54 = vadd.f32 %v645_v53, %v636_v46 }
  0xfb   : > { %v663_v59 = vadd.f32 %v1455_v9, %v650_v54 }
  0xfc   : > { %v411_v57 = vpop.permute.xlu1 %410  ;;  %v409_v61 = vpop.permute.xlu0 %408 }
  0xfd   : > { %v414_v0 = vadd.f32 %v409_v61, %v397_v60  ;;  %v623_v60 = vmul.f32 %v621_v40, %v1234_v1 }
  0xff   : > { %v637_v37 = vadd.f32 %v633_v29, %v623_v60 }
 0x100   : > { %v544_v62 = vpop.permute.xlu1 %543  ;;  %v542_v3 = vpop.permute.xlu0 %541 }
 0x101   : > { %v547_v14 = vadd.f32 %v542_v3, %v530_v49 }
 0x104   : > { %v677_v4 = vpop.permute.xlu1 %676  ;;  %v675_v6 = vpop.permute.xlu0 %674 }
 0x105   : > { %v680_v24 = vadd.f32 %v675_v6, %v663_v59 }
 0x108   : > { %v428_v12 = vpop.permute.xlu1 %427  ;;  %v426_v13 = vpop.permute.xlu0 %425 }
 0x109   : > { %v431_v5 = vadd.f32 %v426_v13, %v414_v0 }
 0x10b   : > { %v444_v8 = vadd.f32 %v1475_v33, %v431_v5  ;;  %v385_v33 = vadd.f32 %v381_v38, %v371_v34  ;;  %v651_v38 = vadd.f32 %v647_v48, %v637_v37 }
 0x10c   : > { %v561_v20 = vpop.permute.xlu1 %560  ;;  %v559_v10 = vpop.permute.xlu0 %558 }
 0x10d   : > { %v564_v7 = vadd.f32 %v559_v10, %v547_v14  ;;  %v398_v17 = vadd.f32 %v393_v52, %v385_v33  ;;  %v347_v52 = vstv %s1597_s18  ;;  %v664_v48 = vadd.f32 %v659_v2, %v651_v38 }
 0x10f   : > { %v577_v32 = vadd.f32 %v1494_v58, %v564_v7  ;;  %v518_v58 = vadd.f32 %v514_v55, %v504_v51  ;;  %v415_v42 = vadd.f32 %v411_v57, %v398_v17  ;;  %v328_v55 = vadd.f32 %v1562_v15, %v1566_v18 }
 0x110   : > { %v694_v9 = vpop.permute.xlu1 %693  ;;  %v692_v21 = vpop.permute.xlu0 %691  ;;  %v681_v18 = vadd.f32 %v677_v4, %v664_v48 }
 0x111   : > { %v697_v28 = vadd.f32 %v692_v21, %v680_v24  ;;  %v531_v1 = vadd.f32 %v526_v56, %v518_v58  ;;  %v432_v25 = vadd.f32 %v428_v12, %v415_v42  ;;  %v614_v12 = vstv %s1611_s26 }
 0x112   : > { %v698_v54 = vadd.f32 %v694_v9, %v681_v18 }
 0x113   : > { %v1593_v44 = vadd.f32 %v1509_v23, %v697_v28  ;;  %v548_v46 = vadd.f32 %v544_v62, %v531_v1  ;;  %v445_v56 = vadd.f32 %v440_v26, %v432_v25 }
 0x114   : > { %v458_v43 = vpop.permute.xlu1 %457  ;;  %v456_v47 = vpop.permute.xlu0 %455  ;;  %v711_v35 = vadd.f32 %v706_v19, %v698_v54 }
 0x115   : > { %v565_v41 = vadd.f32 %v561_v20, %v548_v46  ;;  %v462_v31 = vadd.f32 %v458_v43, %v445_v56  ;;  %v461_v50 = vadd.f32 %v456_v47, %v444_v8 }
 0x117   : > { %v578_v57 = vadd.f32 %v573_v45, %v565_v41 }
 0x118   : > { %v591_v30 = vpop.permute.xlu1 %590  ;;  %v589_v36 = vpop.permute.xlu0 %588 }
 0x119   : > { %v595_v3 = vadd.f32 %v591_v30, %v578_v57  ;;  %v594_v6 = vadd.f32 %v589_v36, %v577_v32 }
 0x11c   : > { %v724_v23 = vpop.permute.xlu1 %723  ;;  %v722_v40 = vpop.permute.xlu0 %721 }
 0x11d   : > { %v728_v20 = vadd.f32 %v724_v23, %v711_v35  ;;  %v727_v10 = vadd.f32 %v722_v40, %v1593_v44 }
 0x120   : > { %v341_v29 = vpop.permute.xlu1 %340  ;;  %v339_v53 = vpop.permute.xlu0 %338 }
 0x121   : > { %v345_v49 = vadd.f32 %v341_v29, %v328_v55  ;;  %v344_v15 = vadd.f32 %v339_v53, %v327_v39 }
 0x123   : > { %v349_v22 = vadd.f32 %v347_v52, %v345_v49  ;;  %v348_v2 = vadd.f32 %v347_v52, %v344_v15 }
 0x124   : > { %v475_v26 = vpop.permute.xlu1 %474  ;;  %v473_v61 = vpop.permute.xlu0 %472 }
 0x125   : > { %353 = vst.msk [vmem:[%s1620_s29 + $0x8] sm:$0x3f] %vm352_vm2, %v349_v22  ;;  %v479_v59 = vadd.f32 %v475_v26, %v462_v31  ;;  %v478_v62 = vadd.f32 %v473_v61, %v461_v50 }
 0x126   : > { %351 = vst.msk [vmem:[%s1620_s29] sm:$0xff] %vm350_vm3, %v348_v2 }
 0x127   : > { %v483_v4 = vadd.f32 %v481_v16, %v479_v59  ;;  %v482_v0 = vadd.f32 %v481_v16, %v478_v62 }
 0x128   : > { %v608_v13 = vpop.permute.xlu1 %607  ;;  %v606_v5 = vpop.permute.xlu0 %605 }
 0x129   : > { %877 = vst.msk [vmem:[%s1620_s29 + $0x18] sm:$0x3f] %vm352_vm2, %v483_v4  ;;  %v612_v45 = vadd.f32 %v608_v13, %v595_v3  ;;  %v611_v14 = vadd.f32 %v606_v5, %v594_v6 }
 0x12a   : > { %876 = vst.msk [vmem:[%s1620_s29 + $0x10] sm:$0xff] %vm350_vm3, %v482_v0 }
 0x12b   : > { %v616_v8 = vadd.f32 %v614_v12, %v612_v45  ;;  %v615_v7 = vadd.f32 %v614_v12, %v611_v14 }
 0x12c   : > { %v741_v24 = vpop.permute.xlu1 %740  ;;  %v739_v19 = vpop.permute.xlu0 %738 }
 0x12d   : > { %889 = vst.msk [vmem:[%s1620_s29 + $0x28] sm:$0x3f] %vm352_vm2, %v616_v8  ;;  %v745_v63 = vadd.f32 %v741_v24, %v728_v20  ;;  %v744_v9 = vadd.f32 %v739_v19, %v727_v10 }
 0x12e   : > { %888 = vst.msk [vmem:[%s1620_s29 + $0x20] sm:$0xff] %vm350_vm3, %v615_v7 }
 0x12f   : > { %v749_v32 = vadd.f32 %v747_v11, %v745_v63  ;;  %v748_v21 = vadd.f32 %v747_v11, %v744_v9 }
 0x131   : > { %901 = vst.msk [vmem:[%s1620_s29 + $0x38] sm:$0x3f] %vm352_vm2, %v749_v32 }
 0x132   : > { %900 = vst.msk [vmem:[%s1620_s29 + $0x30] sm:$0xff] %vm350_vm3, %v748_v21 }
 0x133 PF: > { %p15_p11 = scmp.ge.s32.totalorder %s1121_s17, 4   ;;  %s1676_s12 = smov %s1062_s13 }
 0x134   : > { %s1677_s13 = smov %s1066_s14  ;;  %s1678_s14 = smov %s1131_s20 }
 0x135   : > { %s1679_s15 = smov %s1121_s17  ;;  %17 = sbr.rel (!%p15_p11) target bundleno = 5 (0x5), region = 85 }
 0x13c   :  { %774 = vsyncpa [#allocation3], 1 }
 0x13d   :  { %776 = vsyncpa [#allocation3 + $0x1], 1 }
 0x13e   :  { %777 = vsyncpa [#allocation4], 1 }
 0x13f   :  { %779 = vsyncpa [#allocation4 + $0x1], 1 }
 0x140   :  { %780 = vsyncpa [#allocation5], 1 }
 0x141   :  { %782 = vsyncpa [#allocation5 + $0x1], 1 }

</bundles_post_ra>
